<compile_context>
chip_gen: v5e
topology: v5e:2x2
jax: 0.10.0
libtpu: 0.0.40
codegen_flags: <defaults>
</compile_context>

<pallas_src>
import math

import jax
import jax.numpy as jnp
from jax import lax
from jax.experimental import pallas as pl
from jax.experimental.pallas import tpu as pltpu

# ---- config (small, consistent with the module) ----
B = 2                      # batch
S = 8                      # sequence length
H = 32                     # hidden size
NH = 4                     # num_attention_heads
DH = H // NH               # attention_head_size
BS = B * S                 # flattened rows
NEG_INV_SQRT_DH = -1.0 / math.sqrt(DH)
assert (S & (S - 1)) == 0, "S must be a power of two for the block-id shift"
_S_SHIFT = int(math.log2(S))          # row i of the stacked layout belongs to block i >> _S_SHIFT


def _log_sigmoid(x):
    # numerically stable logsigmoid: min(x, 0) - log(1 + exp(-|x|))
    # (plain log instead of log1p: guaranteed Mosaic lowering, error << tolerance)
    return jnp.minimum(x, 0.0) - jnp.log(1.0 + jnp.exp(-jnp.abs(x)))


def _attn_body(hid_ref, wqk_ref, bqk_ref, mask_ref, out_ref):
    # hid_ref:  (BS, H)     both batch elements, flattened
    # wqk_ref:  (2H, H)     [Wq ; Wk] in PyTorch [out, in] layout (no transpose needed)
    # bqk_ref:  (1, 2H)     [bq | bk]
    # mask_ref: (BS, 1)     or None (static); 1 = keep, 0 = fill query row with -10000
    # out_ref:  (BS, H)
    x = hid_ref[...]                                                      # [16, 32]

    # ---- fused Q/K projection: one MXU push, contraction on the last dims ----
    qk = lax.dot_general(x, wqk_ref[...], (((1,), (1,)), ((), ())),
                         preferred_element_type=jnp.float32) + bqk_ref[...]   # [16, 64]

    # ---- stack heads along sublanes: [NH*BS, DH] = [64, 8] ----
    q_stack = jnp.concatenate(
        [qk[:, h * DH:(h + 1) * DH] for h in range(NH)], axis=0)          # [64, 8]
    k_stack = jnp.concatenate(
        [qk[:, H + h * DH:H + (h + 1) * DH] for h in range(NH)], axis=0)  # [64, 8]
    # fold -(1/sqrt(dh)) into the key side once: scores = q @ k_s.T, no divide later
    k_stack = _log_sigmoid(k_stack) * NEG_INV_SQRT_DH

    # (head, batch) block-diagonal bias: stacked row i = h*BS + b*S + s, so
    # i >> log2(S) == h*B + b identifies the independent attention block.
    row_blk = lax.broadcasted_iota(jnp.int32, (NH * BS, NH * BS), 0) >> _S_SHIFT
    col_blk = lax.broadcasted_iota(jnp.int32, (NH * BS, NH * BS), 1) >> _S_SHIFT
    block_bias = jnp.where(row_blk == col_blk, 0.0, -1e30)                # [64, 64] f32-safe

    # ---- ONE scores matmul for all heads and batches ----
    scores = lax.dot_general(q_stack, k_stack, (((1,), (1,)), ((), ())),
                             preferred_element_type=jnp.float32)          # [64, 64]

    if mask_ref is not None:
        # masked_fill (replace, not additive) over the whole query row; applied
        # BEFORE the block bias so a masked row stays uniform within its block.
        row_masked = jnp.concatenate([mask_ref[...] == 0.0] * NH, axis=0)  # [64, 1]
        scores = jnp.where(row_masked, -10000.0, scores)
    scores = scores + block_bias

    # ---- single numerically-stable softmax over the stacked 64-wide key axis ----
    m = jnp.max(scores, axis=-1, keepdims=True)
    e = jnp.exp(scores - m)                     # cross-block entries underflow to exactly 0
    probs = e / jnp.sum(e, axis=-1, keepdims=True)      # exact divide (fixes prior tolerance fail)

    # ---- context = probs @ query (module multiplies by query_layer, not a value) ----
    ctx_stack = jnp.dot(probs, q_stack, preferred_element_type=jnp.float32)   # [64, 8]

    # un-stack heads (sublane-aligned slices) and store in one lane-dense shot
    out_ref[...] = jnp.concatenate(
        [ctx_stack[h * BS:(h + 1) * BS, :] for h in range(NH)], axis=1)   # [16, 32]


def _kernel_nomask(hid_ref, wqk_ref, bqk_ref, out_ref):
    _attn_body(hid_ref, wqk_ref, bqk_ref, None, out_ref)


def _kernel_mask(hid_ref, wqk_ref, bqk_ref, mask_ref, out_ref):
    _attn_body(hid_ref, wqk_ref, bqk_ref, mask_ref, out_ref)


def fuse_qk_params(wq, bq, wk, bk):
    """Host-side, once per model (NOT per call): stack Q/K weights and biases.

    Weights stay in PyTorch's [out, in] layout -> no transpose anywhere.
    """
    wqk = jnp.concatenate([wq, wk], axis=0)              # [2H, H]
    bqk = jnp.concatenate([bq, bk]).reshape(1, 2 * H)    # [1, 2H]
    return wqk, bqk


_VMEM_SPEC = pl.BlockSpec(memory_space=pltpu.MemorySpace.VMEM)


@jax.jit
def bert_self_attention6(hidden_states, wqk, bqk, attention_mask=None):
    # hidden_states: [B, S, H] f32
    # wqk:           [2H, H]   f32  (pre-fused once via fuse_qk_params)
    # bqk:           [1, 2H]   f32
    # attention_mask: None, or [B, S] f32 (1 keep / 0 -> fill query row with -10000)
    x = hidden_states.reshape(BS, H)                     # contiguous reshape, no data movement
    common = dict(
        out_shape=jax.ShapeDtypeStruct((BS, H), jnp.float32),
        out_specs=_VMEM_SPEC,
    )
    if attention_mask is None:
        out = pl.pallas_call(_kernel_nomask, in_specs=[_VMEM_SPEC] * 3, **common)(
            x, wqk, bqk)
    else:
        mask = attention_mask.astype(jnp.float32).reshape(BS, 1)
        out = pl.pallas_call(_kernel_mask, in_specs=[_VMEM_SPEC] * 4, **common)(
            x, wqk, bqk, mask)
    return out.reshape(B, S, H)


def ref_forward(hidden, wq, bq, wk, bk, attention_mask=None):
    """Pure-JAX reference mirroring the PyTorch module (eval mode)."""
    q = hidden @ wq.T + bq
    k = hidden @ wk.T + bk
    q = q.reshape(B, S, NH, DH).transpose(0, 2, 1, 3)                    # [B, nh, S, dh]
    k = k.reshape(B, S, NH, DH).transpose(0, 2, 1, 3)
    k = jax.nn.log_sigmoid(k).transpose(0, 1, 3, 2)                      # [B, nh, dh, S]
    scores = jnp.matmul(q, -k) / math.sqrt(DH)
    if attention_mask is not None:
        scores = jnp.where(attention_mask[:, None, :, None] == 0, -10000.0, scores)
    probs = jax.nn.softmax(scores, axis=-1)
    ctx = jnp.matmul(probs, q)
    return ctx.transpose(0, 2, 1, 3).reshape(B, S, H)


if __name__ == "__main__":
    key = jax.random.PRNGKey(0)
    k_hid, k_wq, k_bq, k_wk, k_bk = jax.random.split(key, 5)

    hidden = jax.random.normal(k_hid, (B, S, H), dtype=jnp.float32)

    # nn.Linear weights are [out, in]; deterministic init.
    bound = 1.0 / math.sqrt(H)
    wq = jax.random.uniform(k_wq, (H, H), jnp.float32, -bound, bound)
    bq = jax.random.uniform(k_bq, (H,), jnp.float32, -bound, bound)
    wk = jax.random.uniform(k_wk, (H, H), jnp.float32, -bound, bound)
    bk = jax.random.uniform(k_bk, (H,), jnp.float32, -bound, bound)

    # Fuse Q/K params ONCE, outside the jitted per-call path (static weights).
    wqk, bqk = fuse_qk_params(wq, bq, wk, bk)
    wqk, bqk = jax.block_until_ready((wqk, bqk))

    # --- attention_mask=None path (the default module usage) ---
    out = jax.block_until_ready(bert_self_attention6(hidden, wqk, bqk))
    ref = ref_forward(hidden, wq, bq, wk, bk)
    assert out.shape == (B, S, H)
    assert jnp.allclose(out, ref, atol=1e-3, rtol=1e-3), (
        f"max err {float(jnp.max(jnp.abs(out - ref)))}")

    # --- masked path (query-row masking) ---
    mask = jnp.ones((B, S), dtype=jnp.float32).at[0, 3].set(0.0).at[1, 5].set(0.0)
    out_m = jax.block_until_ready(
        bert_self_attention6(hidden, wqk, bqk, attention_mask=mask))
    ref_m = ref_forward(hidden, wq, bq, wk, bk, attention_mask=mask)
    assert jnp.allclose(out_m, ref_m, atol=1e-3, rtol=1e-3), (
        f"masked max err {float(jnp.max(jnp.abs(out_m - ref_m)))}")

    print("KERNEL_OK")
</pallas_src>

<mosaic_0001>
module attributes {stable_mosaic.version = 11 : i64} {
  func.func @_kernel_nomask(%arg0: memref<16x32xf32, #tpu.memory_space<vmem>>, %arg1: memref<64x32xf32, #tpu.memory_space<vmem>>, %arg2: memref<1x64xf32, #tpu.memory_space<vmem>>, %arg3: memref<16x32xf32, #tpu.memory_space<vmem>>) attributes {dimension_semantics = [], scalar_prefetch = 0 : i64, scratch_operands = 0 : i64, tpu.core_type = #tpu.core_type<tc>} {
    %c0 = arith.constant 0 : index
    %c0_0 = arith.constant 0 : index
    %0 = vector.load %arg0[%c0, %c0_0] : memref<16x32xf32, #tpu.memory_space<vmem>>, vector<16x32xf32>
    %c0_1 = arith.constant 0 : index
    %c0_2 = arith.constant 0 : index
    %1 = vector.load %arg1[%c0_1, %c0_2] : memref<64x32xf32, #tpu.memory_space<vmem>>, vector<64x32xf32>
    %cst = arith.constant dense<0.000000e+00> : vector<16x64xf32>
    %2 = tpu.matmul %0, %1, %cst {dimension_numbers = #tpu.dot_dimension_numbers<[1], [1], [0], [0], [0, 0, 1, 0], [], []>} : vector<16x32xf32>, vector<64x32xf32>, vector<16x64xf32> -> vector<16x64xf32>
    %c0_3 = arith.constant 0 : index
    %c0_4 = arith.constant 0 : index
    %3 = vector.load %arg2[%c0_3, %c0_4] : memref<1x64xf32, #tpu.memory_space<vmem>>, vector<1x64xf32>
    %4 = vector.broadcast %3 : vector<1x64xf32> to vector<16x64xf32>
    %5 = arith.addf %2, %4 : vector<16x64xf32>
    %6 = vector.extract_strided_slice %5 {offsets = [0, 0], sizes = [16, 8], strides = [1, 1]} : vector<16x64xf32> to vector<16x8xf32>
    %7 = vector.extract_strided_slice %5 {offsets = [0, 8], sizes = [16, 8], strides = [1, 1]} : vector<16x64xf32> to vector<16x8xf32>
    %8 = vector.extract_strided_slice %5 {offsets = [0, 16], sizes = [16, 8], strides = [1, 1]} : vector<16x64xf32> to vector<16x8xf32>
    %9 = vector.extract_strided_slice %5 {offsets = [0, 24], sizes = [16, 8], strides = [1, 1]} : vector<16x64xf32> to vector<16x8xf32>
    %10 = tpu.concatenate %6, %7, %8, %9 in 0 : vector<16x8xf32>, vector<16x8xf32>, vector<16x8xf32>, vector<16x8xf32> -> vector<64x8xf32>
    %11 = vector.extract_strided_slice %5 {offsets = [0, 32], sizes = [16, 8], strides = [1, 1]} : vector<16x64xf32> to vector<16x8xf32>
    %12 = vector.extract_strided_slice %5 {offsets = [0, 40], sizes = [16, 8], strides = [1, 1]} : vector<16x64xf32> to vector<16x8xf32>
    %13 = vector.extract_strided_slice %5 {offsets = [0, 48], sizes = [16, 8], strides = [1, 1]} : vector<16x64xf32> to vector<16x8xf32>
    %14 = vector.extract_strided_slice %5 {offsets = [0, 56], sizes = [16, 8], strides = [1, 1]} : vector<16x64xf32> to vector<16x8xf32>
    %15 = tpu.concatenate %11, %12, %13, %14 in 0 : vector<16x8xf32>, vector<16x8xf32>, vector<16x8xf32>, vector<16x8xf32> -> vector<64x8xf32>
    %cst_5 = arith.constant 0.000000e+00 : f32
    %16 = vector.broadcast %cst_5 : f32 to vector<64x8xf32>
    %17 = arith.minimumf %15, %16 : vector<64x8xf32>
    %18 = math.absf %15 : vector<64x8xf32>
    %cst_6 = arith.constant 0.000000e+00 : f32
    %19 = vector.broadcast %cst_6 : f32 to vector<64x8xf32>
    %20 = arith.subf %19, %18 : vector<64x8xf32>
    %21 = math.exp %20 : vector<64x8xf32>
    %cst_7 = arith.constant 1.000000e+00 : f32
    %22 = vector.broadcast %cst_7 : f32 to vector<64x8xf32>
    %23 = arith.addf %22, %21 : vector<64x8xf32>
    %24 = math.log %23 : vector<64x8xf32>
    %25 = arith.subf %17, %24 : vector<64x8xf32>
    %cst_8 = arith.constant -0.353553385 : f32
    %26 = vector.broadcast %cst_8 : f32 to vector<64x8xf32>
    %27 = arith.mulf %25, %26 : vector<64x8xf32>
    %28 = tpu.iota {dimensions = array<i32: 0>} : vector<64x64xi32>
    %c3_i32 = arith.constant 3 : i32
    %29 = vector.broadcast %c3_i32 : i32 to vector<64x64xi32>
    %30 = arith.shrsi %28, %29 : vector<64x64xi32>
    %31 = tpu.iota {dimensions = array<i32: 1>} : vector<64x64xi32>
    %c3_i32_9 = arith.constant 3 : i32
    %32 = vector.broadcast %c3_i32_9 : i32 to vector<64x64xi32>
    %33 = arith.shrsi %31, %32 : vector<64x64xi32>
    %34 = arith.cmpi eq, %30, %33 : vector<64x64xi32>
    %cst_10 = arith.constant 0.000000e+00 : f32
    %cst_11 = arith.constant -1.000000e+30 : f32
    %35 = vector.broadcast %cst_10 : f32 to vector<64x64xf32>
    %36 = vector.broadcast %cst_11 : f32 to vector<64x64xf32>
    %37 = arith.select %34, %35, %36 : vector<64x64xi1>, vector<64x64xf32>
    %cst_12 = arith.constant dense<0.000000e+00> : vector<64x64xf32>
    %38 = tpu.matmul %10, %27, %cst_12 {dimension_numbers = #tpu.dot_dimension_numbers<[1], [1], [0], [0], [0, 0, 1, 0], [], []>} : vector<64x8xf32>, vector<64x8xf32>, vector<64x64xf32> -> vector<64x64xf32>
    %39 = arith.addf %38, %37 : vector<64x64xf32>
    %cst_13 = arith.constant dense<0xFF800000> : vector<64xf32>
    %40 = vector.multi_reduction <maximumf>, %39, %cst_13 [1] : vector<64x64xf32> to vector<64xf32>
    %41 = vector.shape_cast %40 : vector<64xf32> to vector<64x1xf32>
    %42 = vector.broadcast %41 : vector<64x1xf32> to vector<64x64xf32>
    %43 = arith.subf %39, %42 : vector<64x64xf32>
    %44 = math.exp %43 : vector<64x64xf32>
    %cst_14 = arith.constant dense<0.000000e+00> : vector<64xf32>
    %45 = vector.multi_reduction <add>, %44, %cst_14 [1] : vector<64x64xf32> to vector<64xf32>
    %46 = vector.shape_cast %45 : vector<64xf32> to vector<64x1xf32>
    %47 = vector.broadcast %46 : vector<64x1xf32> to vector<64x64xf32>
    %48 = arith.divf %44, %47 : vector<64x64xf32>
    %cst_15 = arith.constant dense<0.000000e+00> : vector<64x8xf32>
    %49 = tpu.matmul %48, %10, %cst_15 {dimension_numbers = #tpu.dot_dimension_numbers<[1], [0], [0], [1], [0, 0, 1, 1], [], []>} : vector<64x64xf32>, vector<64x8xf32>, vector<64x8xf32> -> vector<64x8xf32>
    %50 = vector.extract_strided_slice %49 {offsets = [0, 0], sizes = [16, 8], strides = [1, 1]} : vector<64x8xf32> to vector<16x8xf32>
    %51 = vector.extract_strided_slice %49 {offsets = [16, 0], sizes = [16, 8], strides = [1, 1]} : vector<64x8xf32> to vector<16x8xf32>
    %52 = vector.extract_strided_slice %49 {offsets = [32, 0], sizes = [16, 8], strides = [1, 1]} : vector<64x8xf32> to vector<16x8xf32>
    %53 = vector.extract_strided_slice %49 {offsets = [48, 0], sizes = [16, 8], strides = [1, 1]} : vector<64x8xf32> to vector<16x8xf32>
    %54 = tpu.concatenate %50, %51, %52, %53 in 1 : vector<16x8xf32>, vector<16x8xf32>, vector<16x8xf32>, vector<16x8xf32> -> vector<16x32xf32>
    %c0_16 = arith.constant 0 : index
    %c0_17 = arith.constant 0 : index
    %55 = vector.load %arg3[%c0_16, %c0_17] : memref<16x32xf32, #tpu.memory_space<vmem>>, vector<16x32xf32>
    tpu.vector_store %arg3[%c0_16, %c0_17], %54 {strides = array<i32>} : memref<16x32xf32, #tpu.memory_space<vmem>>, vector<16x32xf32>,
    return
  }
}

</mosaic_0001>

<bundles_post_ra>
// kernel: bert_self_attention6.1
= control target key start
LH: loop header
LB: loop body
LE: loop exit
PB: predicated region body
PF: predicated region fallthrough
CT: control target
= control target key end

     0   :  { %vm29_vm0 = vcmask 261120   ;;  %s1067_s0 = inlined_call_operand.vmem [shape: f32[16,32], index: 0, kind: input, shape index: {}]   ;;  %s1068_s1 = inlined_call_operand.vmem [shape: f32[64,32], index: 1, kind: input, shape index: {}]   ;;  %s1069_s2 = inlined_call_operand.vmem [shape: f32[1,64], index: 2, kind: input, shape index: {}]   ;;  %s1070_s3 = inlined_call_operand.hbm [shape: f32[16,32], index: 3, kind: output, shape index: {}]  }
   0x1   :  { %v24_v0 = vld [vmem:[%s1068_s1 + $0x38] sm:$0xff]  ;;  %v23_v1 = vld [vmem:[%s1068_s1 + $0x30] sm:$0xff] }
   0x2   :  { %627 = vmatpush.xpose.msk.msra.mxu0 %vm29_vm0, %v24_v0 }
   0x3   :  { %8 = vsyncpa [#allocation3], 0  ;;  %v22_v2 = vld [vmem:[%s1068_s1 + $0x28] sm:$0xff]  ;;  %v21_v3 = vld [vmem:[%s1068_s1 + $0x20] sm:$0xff]  ;;  %s779_s7 = smov 112   ;;  %s780_s8 = smov 104  }
   0x4   :  { %v20_v4 = vld [vmem:[%s1068_s1 + $0x18] sm:$0xff]  ;;  %v19_v5 = vld [vmem:[%s1068_s1 + $0x10] sm:$0xff]  ;;  %v18_v6 = vld [vmem:[%s1068_s1 + $0x8] sm:$0xff]  ;;  %vm243_vm1 = vcmask 64512   ;;  %vm317_vm3 = vcmask 523264   ;;  %s784_s9 = smov 16  }
   0x5   :  { %v17_v7 = vld [vmem:[%s1068_s1] sm:$0xff]  ;;  %v16_v9 = vld [vmem:[%s1067_s0 + $0x8] sm:$0xff]  ;;  %s778_s1 = smov 120   ;;  %s785_s10 = smov 24  }
   0x6   :  { %628 = vmatpush.xpose.msk.msra.mxu0 %vm29_vm0, %v23_v1  ;;  %v15_v8 = vld [vmem:[%s1067_s0] sm:$0xff]  ;;  %s781_s0 = smov 96   ;;  %s786_s11 = smov [#allocation2]  }
   0x7   :  { %v687_v11 = vld [vmem:[%s1069_s2] ss:$0 sm:$0xff]  ;;  %s783_s2 = smov 8   ;;  %s613_s12 = sshll.u32 %s786_s11, 4  ;;  %s614_s12 = int_to_ptr.vmem [resolvable:$true] %s613_s12 }
   0x8   :  { %s615_s15 = sshll.u32 %s1070_s3, 4  ;;  %s787_s16 = smov 128   ;;  %s616_s15 = int_to_ptr.hbm [resolvable:$true] %s615_s15 }
   0xa   :  { %629 = vmatpush.xpose.msk.msra.mxu0 %vm29_vm0, %v22_v2 }
   0xe   :  { %630 = vmatpush.xpose.msk.msra.mxu0 %vm29_vm0, %v21_v3 }
  0x12   :  { %631 = vmatpush.xpose.msk.msra.mxu0 %vm29_vm0, %v20_v4 }
  0x16   :  { %632 = vmatpush.xpose.msk.msra.mxu0 %vm29_vm0, %v19_v5 }
  0x1a   :  { %633 = vmatpush.xpose.msk.msra.mxu0 %vm29_vm0, %v18_v6 }
  0x1e   :  { %634 = vmatpush.xpose.msk.msra.mxu0 %vm29_vm0, %v17_v7 }
  0x21   :  { %635 = vmatmul.msk.f32.vlgmr.msra.gmra.mxu0 %vm29_vm0, %v15_v8 }
  0x29   :  { %636 = vmatmul.msk.f32.gmra.mxu0 %vm29_vm0, %v16_v9 }
  0x9e   :  { %v77_v10 = vpop.f32.mrf.mxu0 }
  0x9f   :  { %v856_v14 = vadd.f32 %v687_v11, %v77_v10 }
  0xa1   :  { %v111_v38 = vand.u32 2147483647, %v856_v14 }
  0xa3   :  { %v119_v47 = vsub.f32 0.0, %v111_v38 }
  0xa5   :  { %v127_v50 = vmul.f32 1.442695, %v119_v47 }
  0xa6   :  { %v80_v12 = vpop.f32.mrf.mxu0 }
  0xa7   :  { %v851_v13 = vadd.f32 %v687_v11, %v80_v12 }
  0xa9   :  { %87 = vrot.lane.b32.xlu2 %v851_v13, %s778_s1  ;;  %93 = vrot.lane.b32.xlu1 %v851_v13, %s779_s7  ;;  %v112_v22 = vand.u32 2147483647, %v851_v13 }
  0xaa   :  { %99 = vrot.lane.b32.xlu0 %v851_v13, %s780_s8 }
  0xab   :  { %v120_v29 = vsub.f32 0.0, %v112_v22 }
  0xad   :  { %v129_v35 = vmul.f32 1.442695, %v120_v29 }
  0xb1   :  { %85 = vrot.lane.b32.xlu2 %v856_v14, %s778_s1  ;;  %91 = vrot.lane.b32.xlu1 %v856_v14, %s779_s7 }
  0xb2   :  { %97 = vrot.lane.b32.xlu0 %v856_v14, %s780_s8 }
 0x103   :  { %v861_v15 = vpop.permute.xlu2 %87 }
 0x104   :  { %v114_v23 = vand.u32 2147483647, %v861_v15 }
 0x106   :  { %v122_v30 = vsub.f32 0.0, %v114_v23 }
 0x108   :  { %v133_v36 = vmul.f32 1.442695, %v122_v30 }
 0x10b   :  { %v863_v16 = vpop.permute.xlu2 %85 }
 0x10c   :  { %v113_v17 = vand.u32 2147483647, %v863_v16  ;;  %v105_v9 = vmin.f32 %v863_v16, 0.0 }
 0x10e   :  { %v121_v18 = vsub.f32 0.0, %v113_v17 }
 0x110   :  { %v131_v24 = vmul.f32 1.442695, %v121_v18 }
 0x112   :  { %688 = vpow2.f32 %v131_v24 }
 0x118   :  { %v689_v40 = vpop.eup %688 }
 0x119   :  { %v145_v49 = vadd.f32 1.0, %v689_v40 }
 0x11b   :  { %v866_v19 = vpop.permute.xlu1 %93 }
 0x11c   :  { %v116_v20 = vand.u32 2147483647, %v866_v19  ;;  %v869_v21 = vpop.permute.xlu0 %99  ;;  %v108_v60 = vmin.f32 %v866_v19, 0.0 }
 0x11d   :  { %v118_v25 = vand.u32 2147483647, %v869_v21  ;;  %542 = vmatpush.msrb.mxu0 %v869_v21  ;;  %669 = vmatpush.msra.mxu2 %v869_v21  ;;  %v110_v0 = vmin.f32 %v869_v21, 0.0 }
 0x11e   :  { %v124_v26 = vsub.f32 0.0, %v116_v20 }
 0x11f   :  { %v126_v27 = vsub.f32 0.0, %v118_v25 }
 0x120   :  { %v137_v28 = vmul.f32 1.442695, %v124_v26 }
 0x121   :  { %v141_v31 = vmul.f32 1.442695, %v126_v27 }
 0x122   :  { %690 = vpow2.f32 %v137_v28 }
 0x123   :  { %692 = vpow2.f32 %v141_v31  ;;  %v876_v32 = vpop.permute.xlu1 %91 }
 0x124   :  { %v115_v33 = vand.u32 2147483647, %v876_v32  ;;  %v879_v34 = vpop.permute.xlu0 %97  ;;  %694 = vpow2.f32 %v129_v35  ;;  %v107_v11 = vmin.f32 %v876_v32, 0.0  ;;  %v104_v35 = vmin.f32 %v851_v13, 0.0 }
 0x125   :  { %v117_v37 = vand.u32 2147483647, %v879_v34  ;;  %543 = vmatpush.msrb.mxu0 %v879_v34  ;;  %670 = vmatpush.msra.mxu2 %v879_v34  ;;  %696 = vpow2.f32 %v133_v36  ;;  %v109_v20 = vmin.f32 %v879_v34, 0.0 }
 0x126   :  { %v123_v39 = vsub.f32 0.0, %v115_v33  ;;  %v106_v33 = vmin.f32 %v861_v15, 0.0 }
 0x127   :  { %v125_v41 = vsub.f32 0.0, %v117_v37  ;;  %544 = vmatpush.msrb.mxu0 %v866_v19  ;;  %671 = vmatpush.msra.mxu2 %v866_v19 }
 0x128   :  { %v691_v42 = vpop.eup %690  ;;  %v135_v43 = vmul.f32 1.442695, %v123_v39 }
 0x129   :  { %v693_v44 = vpop.eup %692  ;;  %v139_v45 = vmul.f32 1.442695, %v125_v41  ;;  %545 = vmatpush.msrb.mxu0 %v876_v32  ;;  %672 = vmatpush.msra.mxu2 %v876_v32  ;;  %v148_v46 = vadd.f32 1.0, %v691_v42  ;;  %v103_v42 = vmin.f32 %v856_v14, 0.0 }
 0x12a   :  { %698 = vpow2.f32 %v135_v43  ;;  %v150_v48 = vadd.f32 1.0, %v693_v44  ;;  %v695_v51 = vpop.eup %694 }
 0x12b   :  { %700 = vpow2.f32 %v139_v45  ;;  %546 = vmatpush.msrb.mxu0 %v861_v15  ;;  %673 = vmatpush.msra.mxu2 %v861_v15  ;;  %v697_v52 = vpop.eup %696  ;;  %v144_v62 = vadd.f32 1.0, %v695_v51 }
 0x12c   :  { %702 = vlog2.f32 %v148_v46  ;;  %v146_v58 = vadd.f32 1.0, %v697_v52 }
 0x12d   :  { %547 = vmatpush.msrb.mxu0 %v863_v16  ;;  %674 = vmatpush.msra.mxu2 %v863_v16  ;;  %704 = vlog2.f32 %v150_v48 }
 0x12e   :  { %706 = vlog2.f32 %v145_v49 }
 0x12f   :  { %548 = vmatpush.msrb.mxu0 %v851_v13  ;;  %675 = vmatpush.msra.mxu2 %v851_v13  ;;  %708 = vpow2.f32 %v127_v50 }
 0x130   :  { %v699_v53 = vpop.eup %698 }
 0x131   :  { %v701_v54 = vpop.eup %700  ;;  %549 = vmatpush.msrb.mxu0 %v856_v14  ;;  %676 = vmatpush.msra.mxu2 %v856_v14  ;;  %v147_v55 = vadd.f32 1.0, %v699_v53 }
 0x132   :  { %v703_v56 = vpop.eup %702  ;;  %v149_v57 = vadd.f32 1.0, %v701_v54 }
 0x133   :  { %v705_v59 = vpop.eup %704  ;;  %v162_v61 = vmul.f32 0.6931472, %v703_v56  ;;  %710 = vlog2.f32 %v147_v55 }
 0x134   :  { %v707_v63 = vpop.eup %706  ;;  %v166_v1 = vmul.f32 0.6931472, %v705_v59  ;;  %712 = vlog2.f32 %v149_v57 }
 0x135   :  { %v172_v2 = vsub.f32 %v108_v60, %v162_v61  ;;  %714 = vlog2.f32 %v146_v58  ;;  %v709_v4 = vpop.eup %708  ;;  %v156_v6 = vmul.f32 0.6931472, %v707_v63 }
 0x136   :  { %v174_v3 = vsub.f32 %v110_v0, %v166_v1  ;;  %716 = vlog2.f32 %v144_v62  ;;  %v143_v17 = vadd.f32 1.0, %v709_v4 }
 0x137   :  { %v180_v5 = vmul.f32 -0.35355338, %v172_v2  ;;  %v169_v18 = vsub.f32 %v105_v9, %v156_v6 }
 0x138   :  { %v182_v7 = vmul.f32 -0.35355338, %v174_v3  ;;  %718 = vlog2.f32 %v143_v17 }
 0x139   :  { %v711_v8 = vpop.eup %710  ;;  %237 = vrot.lane.b32.xlu2 %v180_v5, %s781_s0  ;;  %v177_v28 = vmul.f32 -0.35355338, %v169_v18 }
 0x13a   :  { %v713_v10 = vpop.eup %712  ;;  %241 = vrot.lane.b32.xlu0 %v182_v7, %s781_s0  ;;  %v160_v12 = vmul.f32 0.6931472, %v711_v8 }
 0x13b   :  { %v164_v22 = vmul.f32 0.6931472, %v713_v10  ;;  %v715_v23 = vpop.eup %714 }
 0x13c   :  { %v171_v24 = vsub.f32 %v107_v11, %v160_v12  ;;  %v717_v25 = vpop.eup %716  ;;  %v158_v30 = vmul.f32 0.6931472, %v715_v23 }
 0x13d   :  { %v173_v26 = vsub.f32 %v109_v20, %v164_v22  ;;  %v154_v31 = vmul.f32 0.6931472, %v717_v25 }
 0x13e   :  { %v179_v27 = vmul.f32 -0.35355338, %v171_v24  ;;  %v170_v36 = vsub.f32 %v106_v33, %v158_v30  ;;  %v719_v37 = vpop.eup %718 }
 0x13f   :  { %v181_v29 = vmul.f32 -0.35355338, %v173_v26  ;;  %v168_v38 = vsub.f32 %v104_v35, %v154_v31  ;;  %v152_v40 = vmul.f32 0.6931472, %v719_v37 }
 0x140   :  { %v178_v39 = vmul.f32 -0.35355338, %v170_v36 }
 0x141   :  { %231 = vrot.lane.b32.xlu2 %v177_v28, %s781_s0  ;;  %239 = vrot.lane.b32.xlu1 %v181_v29, %s781_s0  ;;  %v176_v41 = vmul.f32 -0.35355338, %v168_v38  ;;  %v167_v43 = vsub.f32 %v103_v42, %v152_v40 }
 0x142   :  { %235 = vrot.lane.b32.xlu0 %v179_v27, %s781_s0 }
 0x143   :  { %v175_v44 = vmul.f32 -0.35355338, %v167_v43 }
 0x149   :  { %233 = vrot.lane.b32.xlu1 %v178_v39, %s781_s0 }
 0x14a   :  { %229 = vrot.lane.b32.xlu0 %v176_v41, %s781_s0 }
 0x151   :  { %227 = vrot.lane.b32.xlu1 %v175_v44, %s781_s0 }
 0x193   :  { %v238_v47 = vpop.permute.xlu2 %237 }
 0x19b   :  { %v232_v50 = vpop.permute.xlu2 %231 }
 0x1ac   :  { %v242_v45 = vpop.permute.xlu0 %241 }
 0x1ad   :  { %637 = vmatpush.xpose.msk.msra.mxu1 %vm243_vm1, %v242_v45  ;;  %661 = vmatpush.xpose.msk.msra.mxu3 %vm243_vm1, %v242_v45 }
 0x1b3   :  { %v240_v46 = vpop.permute.xlu1 %239 }
 0x1b4   :  { %638 = vmatpush.xpose.msk.msra.mxu1 %vm243_vm1, %v240_v46  ;;  %662 = vmatpush.xpose.msk.msra.mxu3 %vm243_vm1, %v240_v46  ;;  %v236_v48 = vpop.permute.xlu0 %235 }
 0x1b8   :  { %639 = vmatpush.xpose.msk.msra.mxu1 %vm243_vm1, %v238_v47  ;;  %663 = vmatpush.xpose.msk.msra.mxu3 %vm243_vm1, %v238_v47 }
 0x1bb   :  { %v234_v49 = vpop.permute.xlu1 %233 }
 0x1bc   :  { %640 = vmatpush.xpose.msk.msra.mxu1 %vm243_vm1, %v236_v48  ;;  %664 = vmatpush.xpose.msk.msra.mxu3 %vm243_vm1, %v236_v48  ;;  %v230_v51 = vpop.permute.xlu0 %229 }
 0x1c0   :  { %641 = vmatpush.xpose.msk.msra.mxu1 %vm243_vm1, %v234_v49  ;;  %665 = vmatpush.xpose.msk.msra.mxu3 %vm243_vm1, %v234_v49 }
 0x1c3   :  { %v228_v52 = vpop.permute.xlu1 %227 }
 0x1c4   :  { %642 = vmatpush.xpose.msk.msra.mxu1 %vm243_vm1, %v232_v50  ;;  %666 = vmatpush.xpose.msk.msra.mxu3 %vm243_vm1, %v232_v50 }
 0x1c8   :  { %643 = vmatpush.xpose.msk.msra.mxu1 %vm243_vm1, %v230_v51  ;;  %667 = vmatpush.xpose.msk.msra.mxu3 %vm243_vm1, %v230_v51 }
 0x1cc   :  { %644 = vmatpush.xpose.msk.msra.mxu1 %vm243_vm1, %v228_v52  ;;  %668 = vmatpush.xpose.msk.msra.mxu3 %vm243_vm1, %v228_v52 }
 0x1cf   :  { %645 = vmatmul.msk.f32.vlgmr.msra.gmra.mxu1 %vm243_vm1, %v856_v14  ;;  %649 = vmatmul.msk.f32.vlgmr.msra.gmra.mxu3 %vm243_vm1, %v876_v32  ;;  %v183_v14 = vlaneseq }
 0x1d1   :  { %v945_v32 = vshrl.u32 %v183_v14, 7  ;;  %v201_v53 = vand.u32 127, %v183_v14 }
 0x1d3   :  { %v189_v60 = vadd.s32 40, %v945_v32  ;;  %v187_v61 = vadd.s32 24, %v945_v32  ;;  %v190_v4 = vadd.s32 48, %v945_v32  ;;  %v191_v5 = vadd.s32 56, %v945_v32 }
 0x1d4   :  { %v185_v33 = vadd.s32 8, %v945_v32  ;;  %v192_v43 = vshra.s32 %v945_v32, 3 }
 0x1d5   :  { %v197_v62 = vshra.s32 %v189_v60, 3  ;;  %v195_v1 = vshra.s32 %v187_v61, 3  ;;  %v198_v8 = vshra.s32 %v190_v4, 3  ;;  %v199_v9 = vshra.s32 %v191_v5, 3 }
 0x1d6   :  { %v193_v36 = vshra.s32 %v185_v33, 3 }
 0x1d7   :  { %646 = vmatmul.msk.f32.gmra.mxu1 %vm243_vm1, %v851_v13  ;;  %650 = vmatmul.msk.f32.gmra.mxu3 %vm243_vm1, %v866_v19  ;;  %v188_v13 = vadd.s32 32, %v945_v32  ;;  %v948_v19 = vshra.s32 %v201_v53, 3 }
 0x1d9   :  { %v196_v54 = vshra.s32 %v188_v13, 3  ;;  %vm208_vm5 = vcmp.eq.s32.totalorder %v197_v62, %v948_v19  ;;  %vm206_vm6 = vcmp.eq.s32.totalorder %v195_v1, %v948_v19  ;;  %vm209_vm7 = vcmp.eq.s32.totalorder %v198_v8, %v948_v19 }
 0x1da   :  { %vm210_vm8 = vcmp.eq.s32.totalorder %v199_v9, %v948_v19  ;;  %vm204_vm9 = vcmp.eq.s32.totalorder %v193_v36, %v948_v19  ;;  %vm203_vm10 = vcmp.eq.s32.totalorder %v192_v43, %v948_v19 }
 0x1db   :  { %vm207_vm2 = vcmp.eq.s32.totalorder %v196_v54, %v948_v19 }
 0x1df   :  { %647 = vmatmul.msk.f32.gmra.mxu1 %vm243_vm1, %v863_v16  ;;  %651 = vmatmul.msk.f32.gmra.mxu3 %vm243_vm1, %v879_v34  ;;  %v186_v16 = vadd.s32 16, %v945_v32  ;;  %v782_v34 = vmov -1e+30  }
 0x1e0   :  { %v216_v7 = vsel %vm208_vm5, 0.0, %v782_v34  ;;  %v214_v11 = vsel %vm206_vm6, 0.0, %v782_v34  ;;  %v217_v23 = vsel %vm209_vm7, 0.0, %v782_v34  ;;  %v218_v24 = vsel %vm210_vm8, 0.0, %v782_v34 }
 0x1e1   :  { %v194_v57 = vshra.s32 %v186_v16, 3  ;;  %v212_v41 = vsel %vm204_vm9, 0.0, %v782_v34  ;;  %v211_v14 = vsel %vm203_vm10, 0.0, %v782_v34 }
 0x1e3   :  { %vm205_vm4 = vcmp.eq.s32.totalorder %v194_v57, %v948_v19 }
 0x1e4   :  { %v213_v0 = vsel %vm205_vm4, 0.0, %v782_v34 }
 0x1e7   :  { %648 = vmatmul.msk.f32.gmra.mxu1 %vm243_vm1, %v861_v15  ;;  %652 = vmatmul.msk.f32.gmra.mxu3 %vm243_vm1, %v869_v21  ;;  %v215_v15 = vsel %vm207_vm2, 0.0, %v782_v34 }
 0x24c   :  { %v950_v55 = vpop.f32.mrf.mxu1 }
 0x24d   :  { %v294_v13 = vadd.f32 %v950_v55, %v211_v14 }
 0x24f   :  { %v318_v57 = vsel %vm317_vm3, %v294_v13, -inf }
 0x252   :  { %v305_v56 = vpop.f32.mrf.mxu3 }
 0x253   :  { %v306_v21 = vadd.f32 %v305_v56, %v215_v15 }
 0x254   :  { %v296_v58 = vpop.f32.mrf.mxu1 }
 0x255   :  { %v330_v59 = vsel %vm317_vm3, %v306_v21, -inf  ;;  %v297_v44 = vadd.f32 %v296_v58, %v212_v41 }
 0x256   :  { %331 = vmax.xlane.f32.xlu1 %v330_v59 }
 0x257   :  { %v321_v48 = vsel %vm317_vm3, %v297_v44, -inf }
 0x25a   :  { %v308_v63 = vpop.f32.mrf.mxu3 }
 0x25b   :  { %v309_v12 = vadd.f32 %v308_v63, %v216_v7 }
 0x25c   :  { %v299_v2 = vpop.f32.mrf.mxu1 }
 0x25d   :  { %v300_v3 = vadd.f32 %v299_v2, %v213_v0  ;;  %v333_v22 = vsel %vm317_vm3, %v309_v12, -inf }
 0x25f   :  { %v324_v6 = vsel %vm317_vm3, %v300_v3, -inf }
 0x260   :  { %325 = vmax.xlane.f32.xlu2 %v324_v6 }
 0x262   :  { %v311_v10 = vpop.f32.mrf.mxu3 }
 0x263   :  { %v312_v26 = vadd.f32 %v311_v10, %v217_v23 }
 0x264   :  { %v302_v17 = vpop.f32.mrf.mxu1 }
 0x265   :  { %v303_v18 = vadd.f32 %v302_v17, %v214_v11  ;;  %v336_v29 = vsel %vm317_vm3, %v312_v26, -inf }
 0x267   :  { %v327_v20 = vsel %vm317_vm3, %v303_v18, -inf }
 0x268   :  { %328 = vmax.xlane.f32.xlu0 %v327_v20  ;;  %334 = vmax.xlane.f32.xlu2 %v333_v22 }
 0x26a   :  { %v314_v25 = vpop.f32.mrf.mxu3 }
 0x26b   :  { %v315_v27 = vadd.f32 %v314_v25, %v218_v24 }
 0x26d   :  { %v339_v28 = vsel %vm317_vm3, %v315_v27, -inf }
 0x270   :  { %340 = vmax.xlane.f32.xlu0 %v339_v28  ;;  %337 = vmax.xlane.f32.xlu2 %v336_v29 }
 0x2c9   :  { %v332_v30 = vpop.xlane.xlu1 %331 }
 0x2ca   :  { %v346_v31 = vsub.f32 %v306_v21, %v332_v30 }
 0x2cc   :  { %v358_v35 = vmul.f32 1.442695, %v346_v31 }
 0x2ce   :  { %720 = vpow2.f32 %v358_v35 }
 0x2d3   :  { %v326_v37 = vpop.xlane.xlu2 %325 }
 0x2d4   :  { %v977_v38 = vpop.eup %720  ;;  %v344_v39 = vsub.f32 %v300_v3, %v326_v37 }
 0x2d5   :  { %v378_v40 = vsel %vm317_vm3, %v977_v38, 0.0 }
 0x2d6   :  { %v354_v42 = vmul.f32 1.442695, %v344_v39  ;;  %379 = vadd.xlane.f32.xlu0 %v378_v40 }
 0x2d8   :  { %722 = vpow2.f32 %v354_v42 }
 0x2db   :  { %v329_v45 = vpop.xlane.xlu0 %328  ;;  %v335_v46 = vpop.xlane.xlu2 %334 }
 0x2dc   :  { %v345_v47 = vsub.f32 %v303_v18, %v329_v45  ;;  %v347_v51 = vsub.f32 %v309_v12, %v335_v46 }
 0x2de   :  { %v985_v49 = vpop.eup %722  ;;  %v356_v50 = vmul.f32 1.442695, %v345_v47  ;;  %322 = vmax.xlane.f32.xlu0 %v321_v48  ;;  %v360_v32 = vmul.f32 1.442695, %v347_v51 }
 0x2df   :  { %v372_v52 = vsel %vm317_vm3, %v985_v49, 0.0 }
 0x2e0   :  { %724 = vpow2.f32 %v356_v50  ;;  %373 = vadd.xlane.f32.xlu1 %v372_v52 }
 0x2e1   :  { %726 = vpow2.f32 %v360_v32 }
 0x2e3   :  { %v341_v53 = vpop.xlane.xlu0 %340  ;;  %v338_v54 = vpop.xlane.xlu2 %337 }
 0x2e4   :  { %v348_v19 = vsub.f32 %v312_v26, %v338_v54  ;;  %v349_v15 = vsub.f32 %v315_v27, %v341_v53 }
 0x2e6   :  { %v991_v16 = vpop.eup %724  ;;  %v362_v56 = vmul.f32 1.442695, %v348_v19  ;;  %v364_v34 = vmul.f32 1.442695, %v349_v15 }
 0x2e7   :  { %v375_v21 = vsel %vm317_vm3, %v991_v16, 0.0  ;;  %v996_v58 = vpop.eup %726 }
 0x2e8   :  { %376 = vadd.xlane.f32.xlu2 %v375_v21  ;;  %319 = vmax.xlane.f32.xlu1 %v318_v57  ;;  %728 = vpow2.f32 %v362_v56  ;;  %v381_v59 = vsel %vm317_vm3, %v996_v58, 0.0 }
 0x2e9   :  { %730 = vpow2.f32 %v364_v34 }
 0x2ee   :  { %v998_v55 = vpop.eup %728 }
 0x2ef   :  { %v384_v60 = vsel %vm317_vm3, %v998_v55, 0.0  ;;  %v1004_v61 = vpop.eup %730 }
 0x2f0   :  { %382 = vadd.xlane.f32.xlu2 %v381_v59  ;;  %385 = vadd.xlane.f32.xlu1 %v384_v60  ;;  %v387_v62 = vsel %vm317_vm3, %v1004_v61, 0.0 }
 0x2f8   :  { %388 = vadd.xlane.f32.xlu2 %v387_v62 }
 0x349   :  { %v1008_v63 = vpop.xlane.xlu0 %379 }
 0x34a   :  { %v461_v52 = vand.u32 2147483648, %v1008_v63  ;;  %vm455_vm7 = vweird.f32 %v1008_v63  ;;  %v459_v53 = vand.u32 2147483647, %v1008_v63 }
 0x34c   :  { %v462_v56 = vor.u32 1.1754944e-38, %v461_v52  ;;  %vm460_vm9 = vcmp.eq.f32.partialorder %v459_v53, 8.507059e+37 }
 0x351   :  { %v323_v0 = vpop.xlane.xlu0 %322 }
 0x352   :  { %v343_v1 = vsub.f32 %v297_v44, %v323_v0 }
 0x353   :  { %v374_v2 = vpop.xlane.xlu1 %373 }
 0x354   :  { %v352_v3 = vmul.f32 1.442695, %v343_v1  ;;  %732 = vrcp.f32 %v374_v2  ;;  %v431_v17 = vand.u32 2147483648, %v374_v2  ;;  %v429_v22 = vand.u32 2147483647, %v374_v2 }
 0x355   :  { %vm425_vm12 = vweird.f32 %v374_v2 }
 0x356   :  { %734 = vpow2.f32 %v352_v3  ;;  %v432_v26 = vor.u32 1.1754944e-38, %v431_v17  ;;  %vm430_vm14 = vcmp.eq.f32.partialorder %v429_v22, 8.507059e+37 }
 0x357   :  { %736 = vrcp.f32 %v1008_v63 }
 0x35a   :  { %v733_v4 = vpop.eup %732 }
 0x35b   :  { %v421_v5 = vmul.f32 %v733_v4, %v374_v2  ;;  %v377_v6 = vpop.xlane.xlu2 %376  ;;  %v320_v7 = vpop.xlane.xlu1 %319  ;;  %vm426_vm11 = vweird.f32 %v733_v4 }
 0x35c   :  { %v1011_v8 = vpop.eup %734  ;;  %738 = vrcp.f32 %v377_v6  ;;  %v342_v9 = vsub.f32 %v294_v13, %v320_v7  ;;  %vm427_vm13 = vmor %vm425_vm12, %vm426_vm11  ;;  %v446_v37 = vand.u32 2147483648, %v377_v6  ;;  %v444_v43 = vand.u32 2147483647, %v377_v6 }
 0x35d   :  { %v1013_v10 = vpop.eup %736  ;;  %v422_v11 = vsub.f32 1.0, %v421_v5  ;;  %v369_v12 = vsel %vm317_vm3, %v1011_v8, 0.0  ;;  %vm440_vm2 = vweird.f32 %v377_v6 }
 0x35e   :  { %v350_v18 = vmul.f32 1.442695, %v342_v9  ;;  %370 = vadd.xlane.f32.xlu1 %v369_v12  ;;  %v451_v23 = vmul.f32 %v1013_v10, %v1008_v63  ;;  %v447_v46 = vor.u32 1.1754944e-38, %v446_v37  ;;  %vm445_vm5 = vcmp.eq.f32.partialorder %v444_v43, 8.507059e+37 }
 0x35f   :  { %v423_v20 = vmul.f32 %v733_v4, %v422_v11  ;;  %vm456_vm6 = vweird.f32 %v1013_v10 }
 0x360   :  { %740 = vpow2.f32 %v350_v18  ;;  %v452_v30 = vsub.f32 1.0, %v451_v23  ;;  %vm457_vm8 = vmor %vm455_vm7, %vm456_vm6 }
 0x361   :  { %v424_v24 = vadd.f32 %v733_v4, %v423_v20 }
 0x362   :  { %v739_v25 = vpop.eup %738  ;;  %v453_v42 = vmul.f32 %v1013_v10, %v452_v30 }
 0x363   :  { %v436_v27 = vmul.f32 %v739_v25, %v377_v6  ;;  %v383_v28 = vpop.xlane.xlu2 %382  ;;  %v428_v29 = vsel %vm427_vm13, %v733_v4, %v424_v24  ;;  %v1019_v31 = vpop.xlane.xlu1 %385  ;;  %vm441_vm15 = vweird.f32 %v739_v25 }
 0x364   :  { %742 = vrcp.f32 %v383_v28  ;;  %v433_v33 = vsel %vm430_vm14, %v432_v26, %v428_v29  ;;  %vm442_vm4 = vmor %vm440_vm2, %vm441_vm15  ;;  %v454_v50 = vadd.f32 %v1013_v10, %v453_v42  ;;  %v476_v60 = vand.u32 2147483648, %v383_v28 }
 0x365   :  { %v437_v35 = vsub.f32 1.0, %v436_v27  ;;  %v434_v39 = vmul.f32 %v985_v49, %v433_v33  ;;  %744 = vrcp.f32 %v1019_v31  ;;  %vm470_vm11 = vweird.f32 %v383_v28 }
 0x366   :  { %v1021_v36 = vpop.eup %740  ;;  %v458_v15 = vsel %vm457_vm8, %v1013_v10, %v454_v50  ;;  %v474_v62 = vand.u32 2147483647, %v383_v28  ;;  %v477_v2 = vor.u32 1.1754944e-38, %v476_v60  ;;  %v491_v6 = vand.u32 2147483648, %v1019_v31 }
 0x367   :  { %v438_v40 = vmul.f32 %v739_v25, %v437_v35  ;;  %v366_v41 = vsel %vm317_vm3, %v1021_v36, 0.0  ;;  %655 = vmatmul.msk.f32.vlgmr.msra.gmra.mxu2 %vm317_vm3, %v434_v39  ;;  %v463_v21 = vsel %vm460_vm9, %v462_v56, %v458_v15  ;;  %vm485_vm15 = vweird.f32 %v1019_v31 }
 0x368   :  { %367 = vadd.xlane.f32.xlu0 %v366_v41  ;;  %vm475_vm13 = vcmp.eq.f32.partialorder %v474_v62, 8.507059e+37  ;;  %v492_v11 = vor.u32 1.1754944e-38, %v491_v6 }
 0x369   :  { %v439_v44 = vadd.f32 %v739_v25, %v438_v40 }
 0x36a   :  { %v743_v45 = vpop.eup %742 }
 0x36b   :  { %v466_v47 = vmul.f32 %v743_v45, %v383_v28  ;;  %v443_v48 = vsel %vm442_vm4, %v739_v25, %v439_v44  ;;  %v389_v49 = vpop.xlane.xlu2 %388  ;;  %v745_v51 = vpop.eup %744  ;;  %vm471_vm10 = vweird.f32 %v743_v45 }
 0x36c   :  { %v448_v32 = vsel %vm445_vm5, %v447_v46, %v443_v48  ;;  %746 = vrcp.f32 %v389_v49  ;;  %v481_v19 = vmul.f32 %v745_v51, %v1019_v31  ;;  %vm472_vm12 = vmor %vm470_vm11, %vm471_vm10  ;;  %vm486_vm14 = vweird.f32 %v745_v51 }
 0x36d   :  { %v467_v14 = vsub.f32 1.0, %v466_v47  ;;  %v449_v13 = vmul.f32 %v991_v16, %v448_v32  ;;  %v464_v16 = vmul.f32 %v977_v38, %v463_v21  ;;  %v489_v38 = vand.u32 2147483647, %v1019_v31  ;;  %vm487_vm2 = vmor %vm485_vm15, %vm486_vm14 }
 0x36e   :  { %v482_v57 = vsub.f32 1.0, %v481_v19  ;;  %v506_v18 = vand.u32 2147483648, %v389_v49  ;;  %vm500_vm6 = vweird.f32 %v389_v49  ;;  %v504_v22 = vand.u32 2147483647, %v389_v49 }
 0x36f   :  { %v468_v54 = vmul.f32 %v743_v45, %v467_v14  ;;  %656 = vmatmul.msk.f32.gmra.mxu2 %vm317_vm3, %v449_v13  ;;  %vm490_vm4 = vcmp.eq.f32.partialorder %v489_v38, 8.507059e+37 }
 0x370   :  { %v483_v63 = vmul.f32 %v745_v51, %v482_v57  ;;  %v507_v23 = vor.u32 1.1754944e-38, %v506_v18  ;;  %vm505_vm8 = vcmp.eq.f32.partialorder %v504_v22, 8.507059e+37 }
 0x371   :  { %v469_v34 = vadd.f32 %v743_v45, %v468_v54 }
 0x372   :  { %v747_v59 = vpop.eup %746  ;;  %v484_v5 = vadd.f32 %v745_v51, %v483_v63 }
 0x373   :  { %v496_v0 = vmul.f32 %v747_v59, %v389_v49  ;;  %v473_v1 = vsel %vm472_vm12, %v743_v45, %v469_v34  ;;  %vm501_vm5 = vweird.f32 %v747_v59 }
 0x374   :  { %v478_v3 = vsel %vm475_vm13, %v477_v2, %v473_v1  ;;  %v488_v10 = vsel %vm487_vm2, %v745_v51, %v484_v5  ;;  %vm502_vm7 = vmor %vm500_vm6, %vm501_vm5  ;;  %vm604_vm5 = vcmask 195584  }
 0x375   :  { %v497_v4 = vsub.f32 1.0, %v496_v0  ;;  %v479_v7 = vmul.f32 %v996_v58, %v478_v3  ;;  %v493_v12 = vsel %vm490_vm4, %v492_v11, %v488_v10  ;;  %vm601_vm4 = vcmask 130048  }
 0x376   :  { %v494_v20 = vmul.f32 %v998_v55, %v493_v12 }
 0x377   :  { %657 = vmatmul.msk.f32.gmra.mxu2 %vm317_vm3, %v464_v16  ;;  %v498_v9 = vmul.f32 %v747_v59, %v497_v4 }
 0x379   :  { %v499_v17 = vadd.f32 %v747_v59, %v498_v9 }
 0x37b   :  { %v503_v58 = vsel %vm502_vm7, %v747_v59, %v499_v17 }
 0x37c   :  { %v508_v24 = vsel %vm505_vm8, %v507_v23, %v503_v58 }
 0x37d   :  { %v509_v25 = vmul.f32 %v1004_v61, %v508_v24 }
 0x37f   :  { %658 = vmatmul.msk.f32.gmra.mxu2 %vm317_vm3, %v479_v7 }
 0x387   :  { %659 = vmatmul.msk.f32.gmra.mxu2 %vm317_vm3, %v494_v20 }
 0x38f   :  { %660 = vmatmul.msk.f32.gmra.mxu2 %vm317_vm3, %v509_v25 }
 0x3d1   :  { %v371_v26 = vpop.xlane.xlu1 %370 }
 0x3d2   :  { %748 = vrcp.f32 %v371_v26  ;;  %v416_v45 = vand.u32 2147483648, %v371_v26  ;;  %vm410_vm14 = vweird.f32 %v371_v26  ;;  %v414_v48 = vand.u32 2147483647, %v371_v26 }
 0x3d4   :  { %v417_v50 = vor.u32 1.1754944e-38, %v416_v45  ;;  %vm415_vm2 = vcmp.eq.f32.partialorder %v414_v48, 8.507059e+37 }
 0x3d8   :  { %v749_v28 = vpop.eup %748 }
 0x3d9   :  { %v406_v29 = vmul.f32 %v749_v28, %v371_v26  ;;  %vm411_vm13 = vweird.f32 %v749_v28 }
 0x3da   :  { %vm412_vm15 = vmor %vm410_vm14, %vm411_vm13 }
 0x3db   :  { %v368_v27 = vpop.xlane.xlu0 %367  ;;  %v407_v55 = vsub.f32 1.0, %v406_v29 }
 0x3dc   :  { %750 = vrcp.f32 %v368_v27  ;;  %v401_v35 = vand.u32 2147483648, %v368_v27  ;;  %v399_v40 = vand.u32 2147483647, %v368_v27  ;;  %vm395_vm10 = vweird.f32 %v368_v27 }
 0x3dd   :  { %v408_v37 = vmul.f32 %v749_v28, %v407_v55 }
 0x3de   :  { %v402_v61 = vor.u32 1.1754944e-38, %v401_v35  ;;  %vm400_vm12 = vcmp.eq.f32.partialorder %v399_v40, 8.507059e+37 }
 0x3df   :  { %v409_v44 = vadd.f32 %v749_v28, %v408_v37 }
 0x3e1   :  { %v413_v49 = vsel %vm412_vm15, %v749_v28, %v409_v44 }
 0x3e2   :  { %v751_v30 = vpop.eup %750  ;;  %v418_v51 = vsel %vm415_vm2, %v417_v50, %v413_v49 }
 0x3e3   :  { %v391_v31 = vmul.f32 %v751_v30, %v368_v27  ;;  %vm396_vm9 = vweird.f32 %v751_v30  ;;  %v419_v14 = vmul.f32 %v1011_v8, %v418_v51 }
 0x3e4   :  { %vm397_vm11 = vmor %vm395_vm10, %vm396_vm9 }
 0x3e5   :  { %v392_v33 = vsub.f32 1.0, %v391_v31 }
 0x3e7   :  { %v393_v39 = vmul.f32 %v751_v30, %v392_v33 }
 0x3e9   :  { %v394_v41 = vadd.f32 %v751_v30, %v393_v39 }
 0x3ea   :  { %v557_v42 = vpop.f32.mrf.mxu2 }
 0x3eb   :  { %v398_v43 = vsel %vm397_vm11, %v751_v30, %v394_v41  ;;  %577 = vrot.lane.b32.xlu2 %v557_v42, %s783_s2 }
 0x3ec   :  { %v403_v46 = vsel %vm400_vm12, %v402_v61, %v398_v43 }
 0x3ed   :  { %v404_v47 = vmul.f32 %v1021_v36, %v403_v46 }
 0x3ef   :  { %653 = vmatmul.msk.f32.vlgmr.msrb.gmra.mxu0 %vm317_vm3, %v404_v47 }
 0x3f2   :  { %v560_v52 = vpop.f32.mrf.mxu2 }
 0x3f3   :  { %579 = vrot.lane.b32.xlu0 %v560_v52, %s783_s2 }
 0x3f7   :  { %654 = vmatmul.msk.f32.gmra.mxu0 %vm317_vm3, %v419_v14 }
 0x3fa   :  { %v563_v32 = vpop.f32.mrf.mxu2 }
 0x3fb   :  { %585 = vrot.lane.b32.xlu1 %v563_v32, %s784_s9 }
 0x402   :  { %v566_v13 = vpop.f32.mrf.mxu2 }
 0x403   :  { %587 = vrot.lane.b32.xlu0 %v566_v13, %s784_s9 }
 0x40a   :  { %v569_v36 = vpop.f32.mrf.mxu2 }
 0x40b   :  { %593 = vrot.lane.b32.xlu2 %v569_v36, %s785_s10 }
 0x412   :  { %v572_v53 = vpop.f32.mrf.mxu2 }
 0x413   :  { %595 = vrot.lane.b32.xlu1 %v572_v53, %s785_s10 }
 0x445   :  { %v578_v54 = vpop.permute.xlu2 %577 }
 0x465   :  { %v594_v8 = vpop.permute.xlu2 %593  ;;  %v580_v34 = vpop.permute.xlu0 %579 }
 0x46c   :  { %v551_v19 = vpop.f32.mrf.mxu0 }
 0x46d   :  { %v599_v15 = vsel %vm243_vm1, %v551_v19, %v578_v54  ;;  %v586_v56 = vpop.permute.xlu1 %585 }
 0x46e   :  { %v602_v21 = vsel %vm601_vm4, %v599_v15, %v586_v56 }
 0x46f   :  { %v605_v57 = vsel %vm604_vm5, %v602_v21, %v594_v8 }
 0x470   :  { %607 = vst.msk [vmem:[#allocation2] sm:$0xff] %vm29_vm0, %v605_v57 }
 0x474   :  { %v554_v59 = vpop.f32.mrf.mxu0 }
 0x475   :  { %v600_v60 = vsel %vm243_vm1, %v554_v59, %v580_v34  ;;  %v588_v16 = vpop.permute.xlu0 %587 }
 0x476   :  { %v603_v62 = vsel %vm601_vm4, %v600_v60, %v588_v16 }
 0x485   :  { %v596_v63 = vpop.permute.xlu1 %595 }
 0x486   :  { %v606_v0 = vsel %vm604_vm5, %v603_v62, %v596_v63 }
 0x487   :  { %608 = vst.msk [vmem:[#allocation2 + $0x8] sm:$0xff] %vm29_vm0, %v606_v0 }
 0x488   :  { %621 = dma.vmem_to_hbm [thread:$0]  %s614_s12, 256, %s616_s15, [#allocation3], %s787_s16, %s787_s16, %s783_s2  }
 0x489   :  { %776 = dma.done.wait [#allocation3], 256  }
 0x48a   :  { %777 = vsyncadd [#allocation3], 4294967040 }
 0x48b   :  { %626 = vsyncpa [#allocation3], 1 }

</bundles_post_ra>
